<compile_context>
chip_gen: v6e
topology: v6e:2x2x1
jax: 0.10.0
libtpu: 0.0.40
codegen_flags: <defaults>
</compile_context>

<pallas_src>
import jax
import jax.numpy as jnp
from jax.experimental import pallas as pl
from jax.experimental.pallas import tpu as pltpu

LOG_STD_MAX = 2.0
LOG_STD_MIN = -20.0

# ---------------- model dimensions (small, consistent with the module) -------
B = 4            # batch of graphs
N_NODES = 8      # nodes per graph (robot node = node 0)
H_IN = 16        # raw node feature dim (must be >= 9 for the [4:9] slice)
F_GNN = 32       # GraphExtractor features_dim
FEAT_DIM = F_GNN + 5          # features_dim + 5 (see _update_features_extractor)
NET_ARCH = (256, 256)         # SAC default net_arch
ACTION_DIM = 2

K_FLAT = N_NODES * H_IN       # 128: flattened node-feature width (lane-dense, K=128 dot)
F_PAD = 128                   # GNN feature columns padded to a full vreg lane width
W_IN_N = F_PAD + NET_ARCH[0]  # 384: fused first-stage RHS width (multiple of 128)
MAX_B_TILE = 128              # batch tile cap; whole batch is one block below this


def _actor_kernel(x_ref, eps_ref,
                  w_in_ref, bg_ref,
                  w1_gnn_ref, b1_ref,
                  w2_ref, b2_ref,
                  w_head_ref, b_head_ref,
                  out_ref):
    """One batch tile of the actor forward.  All math in f32, single K=128 entry dot."""
    x = x_ref[...]                                      # [Bt, 128] flattened node feats

    # --- fused stage 1: graph-conv surrogate + robot[:,4:9] direct path -------------
    #   s1[:, :F_PAD]  = robot@Wg_top + mean_pool@Wg_bot   (gnn pre-activation, padded)
    #   s1[:, F_PAD:]  = robot[:,4:9] @ W1[:5,:]           (direct layer-0 contribution)
    s1 = jnp.dot(x, w_in_ref[...], preferred_element_type=jnp.float32)   # [Bt, 384]
    gfeat = jnp.maximum(s1[:, :F_PAD] + bg_ref[...], 0.0)                # [Bt, 128]
    robot_h1 = s1[:, F_PAD:]                                             # [Bt, 256]

    # --- latent_pi layer 0: feats @ W1 == robot_part + gfeat @ W1_gnn ----------------
    h = jnp.maximum(
        jnp.dot(gfeat, w1_gnn_ref[...], preferred_element_type=jnp.float32)
        + robot_h1 + b1_ref[...], 0.0)                                   # [Bt, 256]

    # --- latent_pi layer 1 -----------------------------------------------------------
    h = jnp.maximum(
        jnp.dot(h, w2_ref[...], preferred_element_type=jnp.float32) + b2_ref[...],
        0.0)                                                             # [Bt, 256]

    # --- fused mu | log_std head (single dot, [256, 2*A]) ----------------------------
    head = (jnp.dot(h, w_head_ref[...], preferred_element_type=jnp.float32)
            + b_head_ref[...])                                           # [Bt, 2A]
    mu = head[:, :ACTION_DIM]
    log_std = jnp.clip(head[:, ACTION_DIM:], LOG_STD_MIN, LOG_STD_MAX)

    # --- SquashedDiagGaussian sample (eps==0 -> deterministic mode) -------------------
    act = jnp.tanh(mu + jnp.exp(log_std) * eps_ref[...])

    # single full-slab store: [actions | log_std]
    out_ref[...] = jnp.concatenate([act, log_std], axis=-1)


@jax.jit
def graph_sac_policy_forward(node_feats, eps, kp):
    """node_feats: [B, N, H_in] f32, eps: [B, ACTION_DIM] f32 (zeros => deterministic).

    kp: kernel-ready params produced by prepare_kernel_params().
    Returns (actions [B, A], log_std [B, A]).
    """
    b, n, h_in = node_feats.shape
    x = node_feats.reshape(b, n * h_in)        # free contiguous reshape -> lane-dense

    if b <= MAX_B_TILE:
        # whole batch as one block: no padding copy, no grid-step overhead
        b_tile, b_pad = b, b
    else:
        b_tile = MAX_B_TILE
        b_pad = pl.cdiv(b, b_tile) * b_tile
        if b_pad != b:
            x = jnp.pad(x, ((0, b_pad - b), (0, 0)))
            eps = jnp.pad(eps, ((0, b_pad - b), (0, 0)))

    grid = (b_pad // b_tile,)

    weight_args = (kp["w_in"], kp["bg"],
                   kp["w1_gnn"], kp["b1"],
                   kp["w2"], kp["b2"],
                   kp["w_head"], kp["b_head"])

    in_specs = [
        pl.BlockSpec((b_tile, n * h_in), lambda i: (i, 0)),       # flattened node feats
        pl.BlockSpec((b_tile, ACTION_DIM), lambda i: (i, 0)),     # eps
    ] + [pl.BlockSpec(w.shape, lambda i: (0, 0)) for w in weight_args]   # resident weights

    out = pl.pallas_call(
        _actor_kernel,
        out_shape=jax.ShapeDtypeStruct((b_pad, 2 * ACTION_DIM), jnp.float32),
        grid=grid,
        in_specs=in_specs,
        out_specs=pl.BlockSpec((b_tile, 2 * ACTION_DIM), lambda i: (i, 0)),
        compiler_params=pltpu.CompilerParams(
            dimension_semantics=("parallel",)),
    )(x, eps, *weight_args)

    actions = out[:b, :ACTION_DIM]
    log_std = out[:b, ACTION_DIM:]
    return actions, log_std


def init_params(key):
    """Deterministic synthetic f32 weights (shapes match GraphActor.__init__)."""
    ks = jax.random.split(key, 10)

    def lin(kw, kb, fan_in, fan_out):
        scale = 1.0 / jnp.sqrt(jnp.float32(fan_in))
        w = jax.random.uniform(kw, (fan_in, fan_out), jnp.float32, -scale, scale)
        b = jax.random.uniform(kb, (1, fan_out), jnp.float32, -scale, scale)
        return w, b

    wg, bg = lin(ks[0], ks[1], 2 * H_IN, F_GNN)                 # GraphExtractor surrogate
    w1, b1 = lin(ks[2], ks[3], FEAT_DIM, NET_ARCH[0])           # latent_pi layer 0
    w2, b2 = lin(ks[4], ks[5], NET_ARCH[0], NET_ARCH[1])        # latent_pi layer 1
    wmu, bmu = lin(ks[6], ks[7], NET_ARCH[1], ACTION_DIM)       # mu head
    wls, bls = lin(ks[8], ks[9], NET_ARCH[1], ACTION_DIM)       # log_std head
    return dict(wg=wg, bg=bg, w1=w1, b1=b1, w2=w2, b2=b2,
                wmu=wmu, bmu=bmu, wls=wls, bls=bls)


def prepare_kernel_params(p):
    """One-time weight transform: fold pool/robot-select/slice into lane-dense weights.

    All weights stay f32 (VMEM/DMA are not a constraint at these sizes; keeping f32
    preserves the PyTorch-policy numerics).
    """
    wg_top = p["wg"][:H_IN, :]                                  # robot half     [16, 32]
    wg_bot = p["wg"][H_IN:, :] / jnp.float32(N_NODES)           # pooled half (mean folded)

    # Fused first-stage weight, viewed as [node, feat, out]:
    #   columns 0:F_GNN     -> graph-conv surrogate (every node gets Wg_bot/N,
    #                          node 0 additionally gets Wg_top)
    #   columns F_PAD:      -> robot[:,4:9] direct contribution to latent layer 0
    w_in = jnp.zeros((N_NODES, H_IN, W_IN_N), jnp.float32)
    w_in = w_in.at[:, :, :F_GNN].add(jnp.broadcast_to(wg_bot, (N_NODES, H_IN, F_GNN)))
    w_in = w_in.at[0, :, :F_GNN].add(wg_top)
    w_in = w_in.at[0, 4:9, F_PAD:].set(p["w1"][:5, :])
    w_in = w_in.reshape(K_FLAT, W_IN_N)                         # [128, 384]

    bg_pad = jnp.zeros((1, F_PAD), jnp.float32).at[:, :F_GNN].set(p["bg"])
    w1_gnn = jnp.zeros((F_PAD, NET_ARCH[0]), jnp.float32).at[:F_GNN, :].set(p["w1"][5:, :])

    # fused mu | log_std head
    w_head = jnp.concatenate([p["wmu"], p["wls"]], axis=1)      # [256, 2A]
    b_head = jnp.concatenate([p["bmu"], p["bls"]], axis=1)      # [1, 2A]

    return dict(w_in=w_in, bg=bg_pad,
                w1_gnn=w1_gnn, b1=p["b1"],
                w2=p["w2"], b2=p["b2"],
                w_head=w_head, b_head=b_head)


def reference_forward(node_feats, eps, p):
    """Pure-JAX f32 reference with the original (un-transformed) algebra."""
    robot = node_feats[:, 0, :]
    pooled = jnp.mean(node_feats, axis=1)
    g_in = jnp.concatenate([robot, pooled], axis=-1)
    gfeat = jnp.maximum(g_in @ p["wg"] + p["bg"], 0.0)
    feats = jnp.concatenate([robot[:, 4:9], gfeat], axis=-1)
    h = jnp.maximum(feats @ p["w1"] + p["b1"], 0.0)
    h = jnp.maximum(h @ p["w2"] + p["b2"], 0.0)
    mu = h @ p["wmu"] + p["bmu"]
    log_std = jnp.clip(h @ p["wls"] + p["bls"], LOG_STD_MIN, LOG_STD_MAX)
    return jnp.tanh(mu + jnp.exp(log_std) * eps), log_std


if __name__ == "__main__":
    key = jax.random.PRNGKey(0)
    k_feats, k_params, k_big, k_eps = jax.random.split(key, 4)

    raw_params = init_params(k_params)
    kparams = prepare_kernel_params(raw_params)

    # ---- small batch (B=4): single block, no padding, deterministic=True path ------
    node_feats = jax.random.normal(k_feats, (B, N_NODES, H_IN), jnp.float32)
    eps = jnp.zeros((B, ACTION_DIM), jnp.float32)

    actions, log_std = graph_sac_policy_forward(node_feats, eps, kparams)
    jax.block_until_ready((actions, log_std))

    assert actions.shape == (B, ACTION_DIM)
    assert log_std.shape == (B, ACTION_DIM)
    assert bool(jnp.all(jnp.abs(actions) <= 1.0))                     # tanh-squashed
    assert bool(jnp.all(log_std >= LOG_STD_MIN)) and bool(jnp.all(log_std <= LOG_STD_MAX))

    ref_act, ref_ls = reference_forward(node_feats, eps, raw_params)
    assert bool(jnp.all(jnp.abs(actions - ref_act) < 1e-3))
    assert bool(jnp.all(jnp.abs(log_std - ref_ls) < 1e-3))

    # ---- larger batch (B=200): exercises the tiled multi-step grid + stochastic eps -
    B_BIG = 200
    big_feats = jax.random.normal(k_big, (B_BIG, N_NODES, H_IN), jnp.float32)
    big_eps = jax.random.normal(k_eps, (B_BIG, ACTION_DIM), jnp.float32)

    big_act, big_ls = graph_sac_policy_forward(big_feats, big_eps, kparams)
    jax.block_until_ready((big_act, big_ls))

    ref_act_b, ref_ls_b = reference_forward(big_feats, big_eps, raw_params)
    assert big_act.shape == (B_BIG, ACTION_DIM) and big_ls.shape == (B_BIG, ACTION_DIM)
    assert bool(jnp.all(jnp.abs(big_act - ref_act_b) < 1e-3))
    assert bool(jnp.all(jnp.abs(big_ls - ref_ls_b) < 1e-3))

    print("KERNEL_OK")
</pallas_src>

<mosaic_0001>
module attributes {stable_mosaic.version = 11 : i64} {
  func.func @_actor_kernel(%arg0: i32, %arg1: memref<4x128xf32, #tpu.memory_space<vmem>>, %arg2: memref<4x2xf32, #tpu.memory_space<vmem>>, %arg3: memref<128x384xf32, #tpu.memory_space<vmem>>, %arg4: memref<1x128xf32, #tpu.memory_space<vmem>>, %arg5: memref<128x256xf32, #tpu.memory_space<vmem>>, %arg6: memref<1x256xf32, #tpu.memory_space<vmem>>, %arg7: memref<256x256xf32, #tpu.memory_space<vmem>>, %arg8: memref<1x256xf32, #tpu.memory_space<vmem>>, %arg9: memref<256x4xf32, #tpu.memory_space<vmem>>, %arg10: memref<1x4xf32, #tpu.memory_space<vmem>>, %arg11: memref<4x4xf32, #tpu.memory_space<vmem>>) attributes {dimension_semantics = [#tpu.dimension_semantics<parallel>], iteration_bounds = array<i64: 1>, scalar_prefetch = 0 : i64, scratch_operands = 0 : i64, tpu.core_type = #tpu.core_type<tc>, window_params = [{transform_indices = @transform_0, window_bounds = array<i64: 4, 128>}, {transform_indices = @transform_1, window_bounds = array<i64: 4, 2>}, {pipeline_mode = #tpu.pipeline_mode<synchronous>, transform_indices = @transform_2, window_bounds = array<i64: 128, 384>}, {pipeline_mode = #tpu.pipeline_mode<synchronous>, transform_indices = @transform_3, window_bounds = array<i64: 1, 128>}, {pipeline_mode = #tpu.pipeline_mode<synchronous>, transform_indices = @transform_4, window_bounds = array<i64: 128, 256>}, {pipeline_mode = #tpu.pipeline_mode<synchronous>, transform_indices = @transform_5, window_bounds = array<i64: 1, 256>}, {pipeline_mode = #tpu.pipeline_mode<synchronous>, transform_indices = @transform_6, window_bounds = array<i64: 256, 256>}, {pipeline_mode = #tpu.pipeline_mode<synchronous>, transform_indices = @transform_7, window_bounds = array<i64: 1, 256>}, {pipeline_mode = #tpu.pipeline_mode<synchronous>, transform_indices = @transform_8, window_bounds = array<i64: 256, 4>}, {pipeline_mode = #tpu.pipeline_mode<synchronous>, transform_indices = @transform_9, window_bounds = array<i64: 1, 4>}, {transform_indices = @transform_10, window_bounds = array<i64: 4, 4>}]} {
    %c0 = arith.constant 0 : index
    %c0_0 = arith.constant 0 : index
    %0 = vector.load %arg1[%c0, %c0_0] : memref<4x128xf32, #tpu.memory_space<vmem>>, vector<4x128xf32>
    %c0_1 = arith.constant 0 : index
    %c0_2 = arith.constant 0 : index
    %1 = vector.load %arg3[%c0_1, %c0_2] : memref<128x384xf32, #tpu.memory_space<vmem>>, vector<128x384xf32>
    %cst = arith.constant dense<0.000000e+00> : vector<4x384xf32>
    %2 = tpu.matmul %0, %1, %cst {dimension_numbers = #tpu.dot_dimension_numbers<[1], [0], [0], [1], [0, 0, 1, 1], [], []>} : vector<4x128xf32>, vector<128x384xf32>, vector<4x384xf32> -> vector<4x384xf32>
    %3 = vector.extract_strided_slice %2 {offsets = [0, 0], sizes = [4, 128], strides = [1, 1]} : vector<4x384xf32> to vector<4x128xf32>
    %c0_3 = arith.constant 0 : index
    %c0_4 = arith.constant 0 : index
    %4 = vector.load %arg4[%c0_3, %c0_4] : memref<1x128xf32, #tpu.memory_space<vmem>>, vector<1x128xf32>
    %5 = vector.broadcast %4 : vector<1x128xf32> to vector<4x128xf32>
    %6 = arith.addf %3, %5 : vector<4x128xf32>
    %cst_5 = arith.constant 0.000000e+00 : f32
    %7 = vector.broadcast %cst_5 : f32 to vector<4x128xf32>
    %8 = arith.maximumf %6, %7 : vector<4x128xf32>
    %9 = vector.extract_strided_slice %2 {offsets = [0, 128], sizes = [4, 256], strides = [1, 1]} : vector<4x384xf32> to vector<4x256xf32>
    %c0_6 = arith.constant 0 : index
    %c0_7 = arith.constant 0 : index
    %10 = vector.load %arg5[%c0_6, %c0_7] : memref<128x256xf32, #tpu.memory_space<vmem>>, vector<128x256xf32>
    %cst_8 = arith.constant dense<0.000000e+00> : vector<4x256xf32>
    %11 = tpu.matmul %8, %10, %cst_8 {dimension_numbers = #tpu.dot_dimension_numbers<[1], [0], [0], [1], [0, 0, 1, 1], [], []>} : vector<4x128xf32>, vector<128x256xf32>, vector<4x256xf32> -> vector<4x256xf32>
    %12 = arith.addf %11, %9 : vector<4x256xf32>
    %c0_9 = arith.constant 0 : index
    %c0_10 = arith.constant 0 : index
    %13 = vector.load %arg6[%c0_9, %c0_10] : memref<1x256xf32, #tpu.memory_space<vmem>>, vector<1x256xf32>
    %14 = vector.broadcast %13 : vector<1x256xf32> to vector<4x256xf32>
    %15 = arith.addf %12, %14 : vector<4x256xf32>
    %cst_11 = arith.constant 0.000000e+00 : f32
    %16 = vector.broadcast %cst_11 : f32 to vector<4x256xf32>
    %17 = arith.maximumf %15, %16 : vector<4x256xf32>
    %c0_12 = arith.constant 0 : index
    %c0_13 = arith.constant 0 : index
    %18 = vector.load %arg7[%c0_12, %c0_13] : memref<256x256xf32, #tpu.memory_space<vmem>>, vector<256x256xf32>
    %cst_14 = arith.constant dense<0.000000e+00> : vector<4x256xf32>
    %19 = tpu.matmul %17, %18, %cst_14 {dimension_numbers = #tpu.dot_dimension_numbers<[1], [0], [0], [1], [0, 0, 1, 1], [], []>} : vector<4x256xf32>, vector<256x256xf32>, vector<4x256xf32> -> vector<4x256xf32>
    %c0_15 = arith.constant 0 : index
    %c0_16 = arith.constant 0 : index
    %20 = vector.load %arg8[%c0_15, %c0_16] : memref<1x256xf32, #tpu.memory_space<vmem>>, vector<1x256xf32>
    %21 = vector.broadcast %20 : vector<1x256xf32> to vector<4x256xf32>
    %22 = arith.addf %19, %21 : vector<4x256xf32>
    %cst_17 = arith.constant 0.000000e+00 : f32
    %23 = vector.broadcast %cst_17 : f32 to vector<4x256xf32>
    %24 = arith.maximumf %22, %23 : vector<4x256xf32>
    %c0_18 = arith.constant 0 : index
    %c0_19 = arith.constant 0 : index
    %25 = vector.load %arg9[%c0_18, %c0_19] : memref<256x4xf32, #tpu.memory_space<vmem>>, vector<256x4xf32>
    %cst_20 = arith.constant dense<0.000000e+00> : vector<4x4xf32>
    %26 = tpu.matmul %24, %25, %cst_20 {dimension_numbers = #tpu.dot_dimension_numbers<[1], [0], [0], [1], [0, 0, 1, 1], [], []>} : vector<4x256xf32>, vector<256x4xf32>, vector<4x4xf32> -> vector<4x4xf32>
    %c0_21 = arith.constant 0 : index
    %c0_22 = arith.constant 0 : index
    %27 = vector.load %arg10[%c0_21, %c0_22] : memref<1x4xf32, #tpu.memory_space<vmem>>, vector<1x4xf32>
    %28 = vector.broadcast %27 : vector<1x4xf32> to vector<4x4xf32>
    %29 = arith.addf %26, %28 : vector<4x4xf32>
    %30 = vector.extract_strided_slice %29 {offsets = [0, 0], sizes = [4, 2], strides = [1, 1]} : vector<4x4xf32> to vector<4x2xf32>
    %31 = vector.extract_strided_slice %29 {offsets = [0, 2], sizes = [4, 2], strides = [1, 1]} : vector<4x4xf32> to vector<4x2xf32>
    %cst_23 = arith.constant -2.000000e+01 : f32
    %cst_24 = arith.constant 2.000000e+00 : f32
    %32 = vector.broadcast %cst_23 : f32 to vector<4x2xf32>
    %33 = arith.maximumf %32, %31 : vector<4x2xf32>
    %34 = vector.broadcast %cst_24 : f32 to vector<4x2xf32>
    %35 = arith.minimumf %34, %33 : vector<4x2xf32>
    %36 = math.exp %35 : vector<4x2xf32>
    %c0_25 = arith.constant 0 : index
    %c0_26 = arith.constant 0 : index
    %37 = vector.load %arg2[%c0_25, %c0_26] : memref<4x2xf32, #tpu.memory_space<vmem>>, vector<4x2xf32>
    %38 = arith.mulf %36, %37 : vector<4x2xf32>
    %39 = arith.addf %30, %38 : vector<4x2xf32>
    %40 = math.tanh %39 : vector<4x2xf32>
    %41 = tpu.concatenate %40, %35 in 1 : vector<4x2xf32>, vector<4x2xf32> -> vector<4x4xf32>
    %c0_27 = arith.constant 0 : index
    %c0_28 = arith.constant 0 : index
    %42 = vector.load %arg11[%c0_27, %c0_28] : memref<4x4xf32, #tpu.memory_space<vmem>>, vector<4x4xf32>
    tpu.vector_store %arg11[%c0_27, %c0_28], %41 {strides = array<i32>} : memref<4x4xf32, #tpu.memory_space<vmem>>, vector<4x4xf32>,
    return
  }
  func.func @transform_0(%arg0: i32) -> (i32, i32) {
    %c0_i32 = arith.constant 0 : i32
    %c0_i32_0 = arith.constant 0 : i32
    return %arg0, %c0_i32 : i32, i32
  }
  func.func @transform_1(%arg0: i32) -> (i32, i32) {
    %c0_i32 = arith.constant 0 : i32
    %c0_i32_0 = arith.constant 0 : i32
    return %arg0, %c0_i32 : i32, i32
  }
  func.func @transform_2(%arg0: i32) -> (i32, i32) {
    %c0_i32 = arith.constant 0 : i32
    %c0_i32_0 = arith.constant 0 : i32
    %c0_i32_1 = arith.constant 0 : i32
    return %c0_i32, %c0_i32_0 : i32, i32
  }
  func.func @transform_3(%arg0: i32) -> (i32, i32) {
    %c0_i32 = arith.constant 0 : i32
    %c0_i32_0 = arith.constant 0 : i32
    %c0_i32_1 = arith.constant 0 : i32
    return %c0_i32, %c0_i32_0 : i32, i32
  }
  func.func @transform_4(%arg0: i32) -> (i32, i32) {
    %c0_i32 = arith.constant 0 : i32
    %c0_i32_0 = arith.constant 0 : i32
    %c0_i32_1 = arith.constant 0 : i32
    return %c0_i32, %c0_i32_0 : i32, i32
  }
  func.func @transform_5(%arg0: i32) -> (i32, i32) {
    %c0_i32 = arith.constant 0 : i32
    %c0_i32_0 = arith.constant 0 : i32
    %c0_i32_1 = arith.constant 0 : i32
    return %c0_i32, %c0_i32_0 : i32, i32
  }
  func.func @transform_6(%arg0: i32) -> (i32, i32) {
    %c0_i32 = arith.constant 0 : i32
    %c0_i32_0 = arith.constant 0 : i32
    %c0_i32_1 = arith.constant 0 : i32
    return %c0_i32, %c0_i32_0 : i32, i32
  }
  func.func @transform_7(%arg0: i32) -> (i32, i32) {
    %c0_i32 = arith.constant 0 : i32
    %c0_i32_0 = arith.constant 0 : i32
    %c0_i32_1 = arith.constant 0 : i32
    return %c0_i32, %c0_i32_0 : i32, i32
  }
  func.func @transform_8(%arg0: i32) -> (i32, i32) {
    %c0_i32 = arith.constant 0 : i32
    %c0_i32_0 = arith.constant 0 : i32
    %c0_i32_1 = arith.constant 0 : i32
    return %c0_i32, %c0_i32_0 : i32, i32
  }
  func.func @transform_9(%arg0: i32) -> (i32, i32) {
    %c0_i32 = arith.constant 0 : i32
    %c0_i32_0 = arith.constant 0 : i32
    %c0_i32_1 = arith.constant 0 : i32
    return %c0_i32, %c0_i32_0 : i32, i32
  }
  func.func @transform_10(%arg0: i32) -> (i32, i32) {
    %c0_i32 = arith.constant 0 : i32
    %c0_i32_0 = arith.constant 0 : i32
    return %arg0, %c0_i32 : i32, i32
  }
}

</mosaic_0001>

<bundles_post_ra>
// kernel: graph_sac_policy_forward.1
= control target key start
LH: loop header
LB: loop body
LE: loop exit
PB: predicated region body
PF: predicated region fallthrough
CT: control target
= control target key end

     0   :  { %15 = vsyncpa [#allocation3], 0  ;;  %s1122_s0 = inlined_call_operand.vmem [shape: f32[4,128], index: 0, kind: input, shape index: {}]   ;;  %s1123_s1 = inlined_call_operand.vmem [shape: f32[4,2], index: 1, kind: input, shape index: {}]   ;;  %s1124_s2 = inlined_call_operand.hbm [shape: f32[128,384], index: 2, kind: input, shape index: {}]   ;;  %s1125_s3 = inlined_call_operand.vmem [shape: f32[1,128], index: 3, kind: input, shape index: {}]   ;;  %s1126_s4 = inlined_call_operand.vmem [shape: f32[128,256], index: 4, kind: input, shape index: {}]   ;;  %s1127_s5 = inlined_call_operand.vmem [shape: f32[1,256], index: 5, kind: input, shape index: {}]   ;;  %s1128_s6 = inlined_call_operand.hbm [shape: f32[256,256], index: 6, kind: input, shape index: {}]   ;;  %s1129_s7 = inlined_call_operand.vmem [shape: f32[1,256], index: 7, kind: input, shape index: {}]   ;;  %s1130_s8 = inlined_call_operand.vmem [shape: f32[256,4], index: 8, kind: input, shape index: {}]   ;;  %s1131_s9 = inlined_call_operand.vmem [shape: f32[1,4], index: 9, kind: input, shape index: {}]   ;;  %s1132_s10 = inlined_call_operand.vmem [shape: f32[4,4], index: 10, kind: output, shape index: {}]  }
   0x1   :  { %16 = vsyncpa [#allocation5], 0  ;;  %s812_s13 = smov [#allocation2]  }
   0x2   :  { %s26_s14 = sshll.u32 %s812_s13, 4  ;;  %s27_s14 = int_to_ptr.vmem [resolvable:$true] %s26_s14 }
   0x3   :  { %s776_s15 = scalar_lea.vmem %s27_s14, 6144  ;;  %p781_p1 = scmp.lt.s32.totalorder %s27_s14, %s27_s14 }
   0x4   :  { %p777_p0 = scmp.ne.s32.totalorder %s27_s14, %s776_s15  ;;  %p782_p2 = scmp.lt.s32.totalorder %s776_s15, %s776_s15 }
   0x6   :  { %p783_p3 = por %p782_p2, %p781_p1 }
   0x8   :  { %p784_p4 = pnand %p783_p3, %p777_p0 }
   0xa   :  { %787 = shalt.err (!%p784_p4)
}
   0xb   :  { %s813_s16 = smov 384   ;;  %s814_s17 = smov 24  }
   0xc   :  { %32 = dma.hbm_to_vmem [thread:$0]  %s1124_s2, 6144, %s27_s14, [#allocation3], %s813_s16, %s813_s16, %s814_s17  }
   0xd   :  { %s815_s20 = smov [#allocation4]  }
   0xe   :  { %s44_s21 = sshll.u32 %s815_s20, 4  ;;  %s45_s21 = int_to_ptr.vmem [resolvable:$true] %s44_s21 }
   0xf   :  { %s796_s22 = scalar_lea.vmem %s45_s21, 8192  ;;  %p801_p6 = scmp.lt.s32.totalorder %s45_s21, %s45_s21 }
  0x10   :  { %p797_p5 = scmp.ne.s32.totalorder %s45_s21, %s796_s22  ;;  %p802_p7 = scmp.lt.s32.totalorder %s796_s22, %s796_s22 }
  0x12   :  { %p803_p8 = por %p802_p7, %p801_p6 }
  0x14   :  { %p804_p9 = pnand %p803_p8, %p797_p5 }
  0x16   :  { %807 = shalt.err (!%p804_p9)
}
  0x17   :  { %s816_s23 = smov 256   ;;  %s817_s24 = smov 16  }
  0x18   :  { %50 = dma.hbm_to_vmem [thread:$0]  %s1128_s6, 8192, %s45_s21, [#allocation5], %s816_s23, %s816_s23, %s817_s24  }
  0x19   :  { %808 = dma.done.wait [#allocation3], 6144  }
  0x1a   :  { %809 = vsyncadd [#allocation3], 4294961152 }
  0x1b   :  { %810 = dma.done.wait [#allocation5], 8192  }
  0x1c   :  { %811 = vsyncadd [#allocation5], 4294959104  ;;  %v818_v0 = vmov 0.0   ;;  %v110_v1 = vld [vmem:[#allocation2 + $0x170] sm:$0xff]  ;;  %v109_v2 = vld [vmem:[#allocation2 + $0x168] sm:$0xff]  ;;  %vm819_vm0 = vmmov 0  }
  0x1d   :  { %176 = vmatprep.mubr.f32.mxu0 %v818_v0  ;;  %719 = vmatprep.subr.mxu1 %v818_v0  ;;  %v107_v3 = vld [vmem:[#allocation2 + $0x158] sm:$0xff]  ;;  %v106_v4 = vld [vmem:[#allocation2 + $0x150] sm:$0xff]  ;;  %v104_v5 = vld [vmem:[#allocation2 + $0x140] sm:$0xff]  ;;  %s820_s18 = smov 2   ;;  %vm655_vm1 = vcmask 15360   ;;  %vm657_vm2 = vcmask 27648  }
  0x1e   :  { %112 = vmatprep.subr.mxu0 %v110_v1  ;;  %v103_v6 = vld [vmem:[#allocation2 + $0x138] sm:$0xff]  ;;  %v101_v7 = vld [vmem:[#allocation2 + $0x128] sm:$0xff]  ;;  %v100_v8 = vld [vmem:[#allocation2 + $0x120] sm:$0xff]  ;;  %751 = vmatprep.mubr.msk.f32.mxu1 %vm819_vm0, %v818_v0 }
  0x1f   :  { %113 = vmatpush1.msra.mxu0 %v109_v2  ;;  %v98_v9 = vld [vmem:[#allocation2 + $0x110] sm:$0xff]  ;;  %v97_v10 = vld [vmem:[#allocation2 + $0x108] sm:$0xff]  ;;  %v95_v11 = vld [vmem:[#allocation2 + $0xf8] sm:$0xff] }
  0x20   :  { %114 = vmatprep.subr.mxu0 %v107_v3  ;;  %v94_v12 = vld [vmem:[#allocation2 + $0xf0] sm:$0xff]  ;;  %v92_v13 = vld [vmem:[#allocation2 + $0xe0] sm:$0xff]  ;;  %v91_v14 = vld [vmem:[#allocation2 + $0xd8] sm:$0xff] }
  0x21   :  { %115 = vmatpush1.msra.mxu0 %v106_v4  ;;  %v111_v15 = vld [vmem:[#allocation2 + $0x178] sm:$0xff]  ;;  %v89_v16 = vld [vmem:[#allocation2 + $0xc8] sm:$0xff]  ;;  %v108_v17 = vld [vmem:[#allocation2 + $0x160] sm:$0xff] }
  0x22   :  { %116 = vmatprep.subr.mxu0 %v104_v5  ;;  %720 = vmatpush3.msra.mxu1 %v111_v15  ;;  %v88_v18 = vld [vmem:[#allocation2 + $0xc0] sm:$0xff]  ;;  %v105_v19 = vld [vmem:[#allocation2 + $0x148] sm:$0xff]  ;;  %v86_v20 = vld [vmem:[#allocation2 + $0xb0] sm:$0xff] }
  0x23   :  { %117 = vmatpush1.msra.mxu0 %v103_v6  ;;  %721 = vmatprep.subr.mxu1 %v818_v0  ;;  %v85_v21 = vld [vmem:[#allocation2 + $0xa8] sm:$0xff]  ;;  %v102_v22 = vld [vmem:[#allocation2 + $0x130] sm:$0xff]  ;;  %v83_v23 = vld [vmem:[#allocation2 + $0x98] sm:$0xff] }
  0x24   :  { %118 = vmatprep.subr.mxu0 %v101_v7  ;;  %722 = vmatpush3.msra.mxu1 %v108_v17  ;;  %v82_v24 = vld [vmem:[#allocation2 + $0x90] sm:$0xff]  ;;  %v99_v25 = vld [vmem:[#allocation2 + $0x118] sm:$0xff]  ;;  %v80_v26 = vld [vmem:[#allocation2 + $0x80] sm:$0xff] }
  0x25   :  { %119 = vmatpush1.msra.mxu0 %v100_v8  ;;  %723 = vmatprep.subr.mxu1 %v818_v0  ;;  %v79_v27 = vld [vmem:[#allocation2 + $0x78] sm:$0xff]  ;;  %v96_v28 = vld [vmem:[#allocation2 + $0x100] sm:$0xff]  ;;  %v77_v29 = vld [vmem:[#allocation2 + $0x68] sm:$0xff] }
  0x26   :  { %120 = vmatprep.subr.mxu0 %v98_v9  ;;  %724 = vmatpush3.msra.mxu1 %v105_v19  ;;  %v76_v30 = vld [vmem:[#allocation2 + $0x60] sm:$0xff]  ;;  %v93_v31 = vld [vmem:[#allocation2 + $0xe8] sm:$0xff]  ;;  %v74_v32 = vld [vmem:[#allocation2 + $0x50] sm:$0xff] }
  0x27   :  { %121 = vmatpush1.msra.mxu0 %v97_v10  ;;  %725 = vmatprep.subr.mxu1 %v818_v0  ;;  %v73_v33 = vld [vmem:[#allocation2 + $0x48] sm:$0xff]  ;;  %v90_v34 = vld [vmem:[#allocation2 + $0xd0] sm:$0xff]  ;;  %v71_v35 = vld [vmem:[#allocation2 + $0x38] sm:$0xff] }
  0x28   :  { %122 = vmatprep.subr.mxu0 %v95_v11  ;;  %726 = vmatpush3.msra.mxu1 %v102_v22  ;;  %v70_v36 = vld [vmem:[#allocation2 + $0x30] sm:$0xff]  ;;  %v87_v37 = vld [vmem:[#allocation2 + $0xb8] sm:$0xff]  ;;  %v68_v38 = vld [vmem:[#allocation2 + $0x20] sm:$0xff] }
  0x29   :  { %123 = vmatpush1.msra.mxu0 %v94_v12  ;;  %727 = vmatprep.subr.mxu1 %v818_v0  ;;  %v67_v39 = vld [vmem:[#allocation2 + $0x18] sm:$0xff]  ;;  %v84_v40 = vld [vmem:[#allocation2 + $0xa0] sm:$0xff]  ;;  %v65_v41 = vld [vmem:[#allocation2 + $0x8] sm:$0xff] }
  0x2a   :  { %124 = vmatprep.subr.mxu0 %v92_v13  ;;  %728 = vmatpush3.msra.mxu1 %v99_v25  ;;  %v64_v42 = vld [vmem:[#allocation2] sm:$0xff]  ;;  %v81_v43 = vld [vmem:[#allocation2 + $0x88] sm:$0xff]  ;;  %v293_v45 = vld [vmem:[%s1126_s4 + $0xf8] sm:$0xff] }
  0x2b   :  { %125 = vmatpush1.msra.mxu0 %v91_v14  ;;  %729 = vmatprep.subr.mxu1 %v818_v0  ;;  %v897_v44 = vld [vmem:[%s1122_s0] sm:$0xf]  ;;  %v292_v46 = vld [vmem:[%s1126_s4 + $0xf0] sm:$0xff]  ;;  %v291_v47 = vld [vmem:[%s1126_s4 + $0xe8] sm:$0xff] }
  0x2c   :  { %126 = vmatprep.subr.mxu0 %v89_v16  ;;  %730 = vmatpush3.msra.mxu1 %v96_v28  ;;  %v78_v48 = vld [vmem:[#allocation2 + $0x70] sm:$0xff]  ;;  %v290_v49 = vld [vmem:[%s1126_s4 + $0xe0] sm:$0xff]  ;;  %v289_v50 = vld [vmem:[%s1126_s4 + $0xd8] sm:$0xff] }
  0x2d   :  { %127 = vmatpush1.msra.mxu0 %v88_v18  ;;  %731 = vmatprep.subr.mxu1 %v818_v0  ;;  %v75_v51 = vld [vmem:[#allocation2 + $0x58] sm:$0xff]  ;;  %v288_v52 = vld [vmem:[%s1126_s4 + $0xd0] sm:$0xff]  ;;  %v287_v53 = vld [vmem:[%s1126_s4 + $0xc8] sm:$0xff] }
  0x2e   :  { %128 = vmatprep.subr.mxu0 %v86_v20  ;;  %732 = vmatpush3.msra.mxu1 %v93_v31  ;;  %v286_v54 = vld [vmem:[%s1126_s4 + $0xc0] sm:$0xff]  ;;  %v285_v55 = vld [vmem:[%s1126_s4 + $0xb8] sm:$0xff]  ;;  %v284_v56 = vld [vmem:[%s1126_s4 + $0xb0] sm:$0xff] }
  0x2f   :  { %129 = vmatpush1.msra.mxu0 %v85_v21  ;;  %733 = vmatprep.subr.mxu1 %v818_v0  ;;  %v283_v57 = vld [vmem:[%s1126_s4 + $0xa8] sm:$0xff]  ;;  %v282_v58 = vld [vmem:[%s1126_s4 + $0xa0] sm:$0xff]  ;;  %v281_v59 = vld [vmem:[%s1126_s4 + $0x98] sm:$0xff] }
  0x30   :  { %130 = vmatprep.subr.mxu0 %v83_v23  ;;  %734 = vmatpush3.msra.mxu1 %v90_v34  ;;  %v280_v60 = vld [vmem:[%s1126_s4 + $0x90] sm:$0xff]  ;;  %v279_v61 = vld [vmem:[%s1126_s4 + $0x88] sm:$0xff]  ;;  %v278_v62 = vld [vmem:[%s1126_s4 + $0x80] sm:$0xff] }
  0x31   :  { %131 = vmatpush1.msra.mxu0 %v82_v24  ;;  %735 = vmatprep.subr.mxu1 %v818_v0  ;;  %v277_v63 = vld [vmem:[%s1126_s4 + $0x78] sm:$0xff]  ;;  %v276_v1 = vld [vmem:[%s1126_s4 + $0x70] sm:$0xff]  ;;  %v275_v2 = vld [vmem:[%s1126_s4 + $0x68] sm:$0xff] }
  0x32   :  { %132 = vmatprep.subr.mxu0 %v80_v26  ;;  %736 = vmatpush3.msra.mxu1 %v87_v37  ;;  %v274_v3 = vld [vmem:[%s1126_s4 + $0x60] sm:$0xff]  ;;  %v273_v4 = vld [vmem:[%s1126_s4 + $0x58] sm:$0xff]  ;;  %v272_v5 = vld [vmem:[%s1126_s4 + $0x50] sm:$0xff] }
  0x33   :  { %133 = vmatpush1.msra.mxu0 %v79_v27  ;;  %737 = vmatprep.subr.mxu1 %v818_v0  ;;  %v271_v6 = vld [vmem:[%s1126_s4 + $0x48] sm:$0xff]  ;;  %v270_v7 = vld [vmem:[%s1126_s4 + $0x40] sm:$0xff]  ;;  %v269_v8 = vld [vmem:[%s1126_s4 + $0x38] sm:$0xff] }
  0x34   :  { %134 = vmatprep.subr.mxu0 %v77_v29  ;;  %738 = vmatpush3.msra.mxu1 %v84_v40  ;;  %v268_v9 = vld [vmem:[%s1126_s4 + $0x30] sm:$0xff]  ;;  %v267_v10 = vld [vmem:[%s1126_s4 + $0x28] sm:$0xff]  ;;  %v72_v11 = vld [vmem:[#allocation2 + $0x40] sm:$0xff] }
  0x35   :  { %135 = vmatpush1.msra.mxu0 %v76_v30  ;;  %739 = vmatprep.subr.mxu1 %v818_v0  ;;  %v266_v12 = vld [vmem:[%s1126_s4 + $0x20] sm:$0xff]  ;;  %v265_v13 = vld [vmem:[%s1126_s4 + $0x18] sm:$0xff]  ;;  %v69_v14 = vld [vmem:[#allocation2 + $0x28] sm:$0xff] }
  0x36   :  { %136 = vmatprep.subr.mxu0 %v74_v32  ;;  %740 = vmatpush3.msra.mxu1 %v81_v43  ;;  %v264_v15 = vld [vmem:[%s1126_s4 + $0x10] sm:$0xff]  ;;  %v263_v16 = vld [vmem:[%s1126_s4 + $0x8] sm:$0xff]  ;;  %v262_v18 = vld [vmem:[%s1126_s4] sm:$0xff] }
  0x37   :  { %137 = vmatpush1.msra.mxu0 %v73_v33  ;;  %741 = vmatprep.subr.mxu1 %v818_v0  ;;  %v66_v17 = vld [vmem:[#allocation2 + $0x10] sm:$0xff]  ;;  %v412_v19 = vld [vmem:[#allocation4 + $0xf8] sm:$0xff]  ;;  %v410_v21 = vld [vmem:[#allocation4 + $0xe8] sm:$0xff] }
  0x38   :  { %138 = vmatprep.subr.mxu0 %v71_v35  ;;  %742 = vmatpush3.msra.mxu1 %v78_v48  ;;  %v411_v20 = vld [vmem:[#allocation4 + $0xf0] sm:$0xff]  ;;  %v409_v22 = vld [vmem:[#allocation4 + $0xe0] sm:$0xff]  ;;  %v408_v23 = vld [vmem:[#allocation4 + $0xd8] sm:$0xff] }
  0x39   :  { %139 = vmatpush1.msra.mxu0 %v70_v36  ;;  %743 = vmatprep.subr.mxu1 %v818_v0  ;;  %v407_v24 = vld [vmem:[#allocation4 + $0xd0] sm:$0xff]  ;;  %v406_v25 = vld [vmem:[#allocation4 + $0xc8] sm:$0xff]  ;;  %v405_v26 = vld [vmem:[#allocation4 + $0xc0] sm:$0xff] }
  0x3a   :  { %140 = vmatprep.subr.mxu0 %v68_v38  ;;  %744 = vmatpush3.msra.mxu1 %v75_v51  ;;  %v404_v27 = vld [vmem:[#allocation4 + $0xb8] sm:$0xff]  ;;  %v402_v28 = vld [vmem:[#allocation4 + $0xa8] sm:$0xff]  ;;  %v401_v29 = vld [vmem:[#allocation4 + $0xa0] sm:$0xff] }
  0x3b   :  { %141 = vmatpush1.msra.mxu0 %v67_v39  ;;  %745 = vmatprep.subr.mxu1 %v818_v0  ;;  %v400_v30 = vld [vmem:[#allocation4 + $0x98] sm:$0xff]  ;;  %v399_v31 = vld [vmem:[#allocation4 + $0x90] sm:$0xff]  ;;  %v398_v32 = vld [vmem:[#allocation4 + $0x88] sm:$0xff] }
  0x3c   :  { %142 = vmatprep.subr.mxu0 %v65_v41  ;;  %746 = vmatpush3.msra.mxu1 %v72_v11  ;;  %v397_v33 = vld [vmem:[#allocation4 + $0x80] sm:$0xff]  ;;  %v396_v34 = vld [vmem:[#allocation4 + $0x78] sm:$0xff]  ;;  %v395_v35 = vld [vmem:[#allocation4 + $0x70] sm:$0xff] }
  0x3d   :  { %143 = vmatpush1.msra.mxu0 %v64_v42  ;;  %747 = vmatprep.subr.mxu1 %v818_v0  ;;  %v394_v36 = vld [vmem:[#allocation4 + $0x68] sm:$0xff]  ;;  %v393_v37 = vld [vmem:[#allocation4 + $0x60] sm:$0xff]  ;;  %v392_v38 = vld [vmem:[#allocation4 + $0x58] sm:$0xff] }
  0x3e   :  { %177 = vmatmul.mubr.f32.vlgmr.msra.gmra.mxu0 %v897_v44  ;;  %294 = vmatprep.subr.mxu0 %v293_v45  ;;  %v391_v39 = vld [vmem:[#allocation4 + $0x50] sm:$0xff]  ;;  %v390_v40 = vld [vmem:[#allocation4 + $0x48] sm:$0xff]  ;;  %v389_v41 = vld [vmem:[#allocation4 + $0x40] sm:$0xff] }
  0x3f   :  { %295 = vmatpush1.msra.mxu0 %v292_v46  ;;  %358 = vmatprep.mubr.f32.mxu0 %v818_v0  ;;  %v388_v42 = vld [vmem:[#allocation4 + $0x38] sm:$0xff]  ;;  %v387_v43 = vld [vmem:[#allocation4 + $0x30] sm:$0xff]  ;;  %v385_v45 = vld [vmem:[#allocation4 + $0x20] sm:$0xff] }
  0x40   :  { %296 = vmatprep.subr.mxu0 %v291_v47  ;;  %748 = vmatpush3.msra.mxu1 %v69_v14  ;;  %v384_v46 = vld [vmem:[#allocation4 + $0x18] sm:$0xff]  ;;  %v383_v47 = vld [vmem:[#allocation4 + $0x10] sm:$0xff]  ;;  %v382_v48 = vld [vmem:[#allocation4 + $0x8] sm:$0xff] }
  0x41   :  { %297 = vmatpush1.msra.mxu0 %v290_v49  ;;  %749 = vmatprep.subr.mxu1 %v818_v0  ;;  %v403_v0 = vld [vmem:[#allocation4 + $0xb0] sm:$0xff]  ;;  %v381_v49 = vld [vmem:[#allocation4] sm:$0xff] }
  0x42   :  { %298 = vmatprep.subr.mxu0 %v289_v50  ;;  %750 = vmatpush3.msra.mxu1 %v66_v17  ;;  %v444_v50 = vld [vmem:[#allocation4 + $0x1f8] sm:$0xff]  ;;  %v443_v51 = vld [vmem:[#allocation4 + $0x1f0] sm:$0xff] }
  0x43   :  { %299 = vmatpush1.msra.mxu0 %v288_v52  ;;  %752 = vmatmul.mubr.f32.vlgmr.msra.gmra.mxu1 %v897_v44  ;;  %v386_v44 = vld [vmem:[#allocation4 + $0x28] sm:$0xff] }
  0x44   :  { %300 = vmatprep.subr.mxu0 %v287_v53  ;;  %457 = vmatprep.subr.mxu1 %v412_v19  ;;  %v442_v52 = vld [vmem:[#allocation4 + $0x1e8] sm:$0xff]  ;;  %v441_v53 = vld [vmem:[#allocation4 + $0x1e0] sm:$0xff] }
  0x45   :  { %301 = vmatpush1.msra.mxu0 %v286_v54  ;;  %458 = vmatpush1.msra.mxu1 %v411_v20  ;;  %v440_v54 = vld [vmem:[#allocation4 + $0x1d8] sm:$0xff]  ;;  %v418_v19 = vld [vmem:[#allocation4 + $0x128] sm:$0xff]  ;;  %v417_v20 = vld [vmem:[#allocation4 + $0x120] sm:$0xff] }
  0x46   :  { %302 = vmatprep.subr.mxu0 %v285_v55  ;;  %459 = vmatprep.subr.mxu1 %v410_v21  ;;  %v439_v55 = vld [vmem:[#allocation4 + $0x1d0] sm:$0xff]  ;;  %v416_v21 = vld [vmem:[#allocation4 + $0x118] sm:$0xff] }
  0x47   :  { %303 = vmatpush1.msra.mxu0 %v284_v56  ;;  %460 = vmatpush1.msra.mxu1 %v409_v22  ;;  %v438_v56 = vld [vmem:[#allocation4 + $0x1c8] sm:$0xff]  ;;  %v415_v22 = vld [vmem:[#allocation4 + $0x110] sm:$0xff] }
  0x48   :  { %304 = vmatprep.subr.mxu0 %v283_v57  ;;  %461 = vmatprep.subr.mxu1 %v408_v23  ;;  %v437_v57 = vld [vmem:[#allocation4 + $0x1c0] sm:$0xff]  ;;  %v414_v23 = vld [vmem:[#allocation4 + $0x108] sm:$0xff] }
  0x49   :  { %305 = vmatpush1.msra.mxu0 %v282_v58  ;;  %462 = vmatpush1.msra.mxu1 %v407_v24  ;;  %v436_v58 = vld [vmem:[#allocation4 + $0x1b8] sm:$0xff]  ;;  %v413_v24 = vld [vmem:[#allocation4 + $0x100] sm:$0xff] }
  0x4a   :  { %306 = vmatprep.subr.mxu0 %v281_v59  ;;  %463 = vmatprep.subr.mxu1 %v406_v25  ;;  %v435_v59 = vld [vmem:[#allocation4 + $0x1b0] sm:$0xff]  ;;  %v561_v25 = vld [vmem:[%s1130_s8 + $0xf8] sm:$0xff] }
  0x4b   :  { %307 = vmatpush1.msra.mxu0 %v280_v60  ;;  %464 = vmatpush1.msra.mxu1 %v405_v26  ;;  %v434_v60 = vld [vmem:[#allocation4 + $0x1a8] sm:$0xff]  ;;  %v545_v26 = vld [vmem:[%s1130_s8 + $0x78] sm:$0xff] }
  0x4c   :  { %308 = vmatprep.subr.mxu0 %v279_v61  ;;  %465 = vmatprep.subr.mxu1 %v404_v27  ;;  %v433_v61 = vld [vmem:[#allocation4 + $0x1a0] sm:$0xff]  ;;  %v560_v27 = vld [vmem:[%s1130_s8 + $0xf0] sm:$0xff] }
  0x4d   :  { %309 = vmatpush1.msra.mxu0 %v278_v62  ;;  %466 = vmatpush1.msra.mxu1 %v403_v0  ;;  %v432_v62 = vld [vmem:[#allocation4 + $0x198] sm:$0xff]  ;;  %v544_v0 = vld [vmem:[%s1130_s8 + $0x70] sm:$0xff] }
  0x4e   :  { %310 = vmatprep.subr.mxu0 %v277_v63  ;;  %467 = vmatprep.subr.mxu1 %v402_v28  ;;  %v431_v63 = vld [vmem:[#allocation4 + $0x190] sm:$0xff]  ;;  %v559_v28 = vld [vmem:[%s1130_s8 + $0xe8] sm:$0xff] }
  0x4f   :  { %311 = vmatpush1.msra.mxu0 %v276_v1  ;;  %468 = vmatpush1.msra.mxu1 %v401_v29  ;;  %v430_v1 = vld [vmem:[#allocation4 + $0x188] sm:$0xff] }
  0x50   :  { %312 = vmatprep.subr.mxu0 %v275_v2  ;;  %469 = vmatprep.subr.mxu1 %v400_v30  ;;  %v429_v2 = vld [vmem:[#allocation4 + $0x180] sm:$0xff]  ;;  %v543_v29 = vld [vmem:[%s1130_s8 + $0x68] sm:$0xff] }
  0x51   :  { %313 = vmatpush1.msra.mxu0 %v274_v3  ;;  %470 = vmatpush1.msra.mxu1 %v399_v31  ;;  %v428_v3 = vld [vmem:[#allocation4 + $0x178] sm:$0xff]  ;;  %v558_v30 = vld [vmem:[%s1130_s8 + $0xe0] sm:$0xff] }
  0x52   :  { %314 = vmatprep.subr.mxu0 %v273_v4  ;;  %471 = vmatprep.subr.mxu1 %v398_v32  ;;  %v427_v4 = vld [vmem:[#allocation4 + $0x170] sm:$0xff]  ;;  %v542_v31 = vld [vmem:[%s1130_s8 + $0x60] sm:$0xff]  ;;  %v557_v32 = vld [vmem:[%s1130_s8 + $0xd8] sm:$0xff] }
  0x53   :  { %315 = vmatpush1.msra.mxu0 %v272_v5  ;;  %472 = vmatpush1.msra.mxu1 %v397_v33  ;;  %v426_v5 = vld [vmem:[#allocation4 + $0x168] sm:$0xff]  ;;  %v541_v33 = vld [vmem:[%s1130_s8 + $0x58] sm:$0xff] }
  0x54   :  { %316 = vmatprep.subr.mxu0 %v271_v6  ;;  %473 = vmatprep.subr.mxu1 %v396_v34  ;;  %v425_v6 = vld [vmem:[#allocation4 + $0x160] sm:$0xff]  ;;  %v556_v34 = vld [vmem:[%s1130_s8 + $0xd0] sm:$0xff] }
  0x55   :  { %317 = vmatpush1.msra.mxu0 %v270_v7  ;;  %474 = vmatpush1.msra.mxu1 %v395_v35  ;;  %v424_v7 = vld [vmem:[#allocation4 + $0x158] sm:$0xff]  ;;  %v540_v35 = vld [vmem:[%s1130_s8 + $0x50] sm:$0xff] }
  0x56   :  { %318 = vmatprep.subr.mxu0 %v269_v8  ;;  %475 = vmatprep.subr.mxu1 %v394_v36  ;;  %v423_v8 = vld [vmem:[#allocation4 + $0x150] sm:$0xff]  ;;  %v555_v36 = vld [vmem:[%s1130_s8 + $0xc8] sm:$0xff] }
  0x57   :  { %319 = vmatpush1.msra.mxu0 %v268_v9  ;;  %476 = vmatpush1.msra.mxu1 %v393_v37  ;;  %v665_v9 = vld [vmem:[%s1125_s3] ss:$0 sm:$0xff]  ;;  %v539_v37 = vld [vmem:[%s1130_s8 + $0x48] sm:$0xff] }
  0x58   :  { %320 = vmatprep.subr.mxu0 %v267_v10  ;;  %477 = vmatprep.subr.mxu1 %v392_v38  ;;  %v554_v38 = vld [vmem:[%s1130_s8 + $0xc0] sm:$0xff] }
  0x59   :  { %321 = vmatpush1.msra.mxu0 %v266_v12  ;;  %478 = vmatpush1.msra.mxu1 %v391_v39  ;;  %v538_v39 = vld [vmem:[%s1130_s8 + $0x40] sm:$0xff] }
  0x5a   :  { %322 = vmatprep.subr.mxu0 %v265_v13  ;;  %479 = vmatprep.subr.mxu1 %v390_v40  ;;  %v422_v13 = vld [vmem:[#allocation4 + $0x148] sm:$0xff]  ;;  %v553_v40 = vld [vmem:[%s1130_s8 + $0xb8] sm:$0xff] }
  0x5b   :  { %323 = vmatpush1.msra.mxu0 %v264_v15  ;;  %480 = vmatpush1.msra.mxu1 %v389_v41  ;;  %v421_v15 = vld [vmem:[#allocation4 + $0x140] sm:$0xff]  ;;  %v537_v41 = vld [vmem:[%s1130_s8 + $0x38] sm:$0xff] }
  0x5c   :  { %324 = vmatprep.subr.mxu0 %v263_v16  ;;  %481 = vmatprep.subr.mxu1 %v388_v42  ;;  %v420_v16 = vld [vmem:[#allocation4 + $0x138] sm:$0xff]  ;;  %v552_v42 = vld [vmem:[%s1130_s8 + $0xb0] sm:$0xff] }
  0x5d   :  { %325 = vmatpush1.msra.mxu0 %v262_v18  ;;  %482 = vmatpush1.msra.mxu1 %v387_v43  ;;  %v419_v18 = vld [vmem:[#allocation4 + $0x130] sm:$0xff] }
  0x5e   :  { %483 = vmatprep.subr.mxu1 %v386_v44  ;;  %684 = vmatprep.subr.mxu0 %v561_v25  ;;  %v536_v43 = vld [vmem:[%s1130_s8 + $0x30] sm:$0xff]  ;;  %v551_v44 = vld [vmem:[%s1130_s8 + $0xa8] sm:$0xff] }
  0x5f   :  { %484 = vmatpush1.msra.mxu1 %v385_v45  ;;  %v535_v45 = vld [vmem:[%s1130_s8 + $0x28] sm:$0xff] }
  0x60   :  { %485 = vmatprep.subr.mxu1 %v384_v46  ;;  %v550_v46 = vld [vmem:[%s1130_s8 + $0xa0] sm:$0xff] }
  0x61   :  { %486 = vmatpush1.msra.mxu1 %v383_v47  ;;  %v534_v47 = vld [vmem:[%s1130_s8 + $0x20] sm:$0xff] }
  0x62   :  { %487 = vmatprep.subr.mxu1 %v382_v48  ;;  %v367_v48 = vlaneseq }
  0x63   :  { %488 = vmatpush1.msra.mxu1 %v381_v49 }
  0x64   :  { %489 = vmatprep.subr.mxu1 %v444_v50  ;;  %v368_v49 = vshrl.u32 %v367_v48, 7 }
  0x65   :  { %490 = vmatpush2.msra.mxu1 %v443_v51  ;;  %v365_v51 = vld [vmem:[%s1127_s5] sm:$0x3] }
  0x66   :  { %491 = vmatprep.subr.mxu1 %v442_v52  ;;  %v369_v50 = vsub.s32 0, %v368_v49  ;;  %v373_v52 = vsub.s32 1, %v368_v49 }
  0x67   :  { %492 = vmatpush2.msra.mxu1 %v441_v53 }
  0x68   :  { %493 = vmatprep.subr.mxu1 %v440_v54 }
  0x69   :  { %494 = vmatpush2.msra.mxu1 %v439_v55  ;;  %v370_v55 = vrot.slane %v365_v51, %v369_v50 }
  0x6a   :  { %495 = vmatprep.subr.mxu1 %v438_v56 }
  0x6b   :  { %496 = vmatpush2.msra.mxu1 %v437_v57  ;;  %v374_v57 = vrot.slane %v365_v51, %v373_v52 }
  0x6c   :  { %497 = vmatprep.subr.mxu1 %v436_v58 }
  0x6d   :  { %498 = vmatpush2.msra.mxu1 %v435_v59 }
  0x6e   :  { %499 = vmatprep.subr.mxu1 %v434_v60 }
  0x6f   :  { %500 = vmatpush2.msra.mxu1 %v433_v61 }
  0x70   :  { %501 = vmatprep.subr.mxu1 %v432_v62 }
  0x71   :  { %502 = vmatpush2.msra.mxu1 %v431_v63 }
  0x72   :  { %503 = vmatprep.subr.mxu1 %v430_v1  ;;  %v549_v1 = vld [vmem:[%s1130_s8 + $0x98] sm:$0xff] }
  0x73   :  { %504 = vmatpush2.msra.mxu1 %v429_v2  ;;  %v533_v2 = vld [vmem:[%s1130_s8 + $0x18] sm:$0xff] }
  0x74   :  { %505 = vmatprep.subr.mxu1 %v428_v3  ;;  %v548_v3 = vld [vmem:[%s1130_s8 + $0x90] sm:$0xff] }
  0x75   :  { %506 = vmatpush2.msra.mxu1 %v427_v4  ;;  %v532_v4 = vld [vmem:[%s1130_s8 + $0x10] sm:$0xff] }
  0x76   :  { %507 = vmatprep.subr.mxu1 %v426_v5  ;;  %v547_v5 = vld [vmem:[%s1130_s8 + $0x88] sm:$0xff] }
  0x77   :  { %508 = vmatpush2.msra.mxu1 %v425_v6  ;;  %v531_v6 = vld [vmem:[%s1130_s8 + $0x8] sm:$0xff] }
  0x78   :  { %509 = vmatprep.subr.mxu1 %v424_v7  ;;  %v546_v7 = vld [vmem:[%s1130_s8 + $0x80] sm:$0xff] }
  0x79   :  { %510 = vmatpush2.msra.mxu1 %v423_v8  ;;  %v530_v8 = vld [vmem:[%s1130_s8] sm:$0xff] }
  0x7a   :  { %511 = vmatprep.subr.mxu1 %v422_v13 }
  0x7b   :  { %512 = vmatpush2.msra.mxu1 %v421_v15 }
  0x7c   :  { %513 = vmatprep.subr.mxu1 %v420_v16 }
  0x7d   :  { %514 = vmatpush2.msra.mxu1 %v419_v18 }
  0x7e   :  { %515 = vmatprep.subr.mxu1 %v418_v19 }
  0x7f   :  { %516 = vmatpush2.msra.mxu1 %v417_v20  ;;  %v666_v20 = vld [vmem:[%s1131_s9] ss:$0 sm:$0xff] }
  0x80   :  { %517 = vmatprep.subr.mxu1 %v416_v21 }
  0x81   :  { %518 = vmatpush2.msra.mxu1 %v415_v22 }
  0x82   :  { %519 = vmatprep.subr.mxu1 %v414_v23 }
  0x83   :  { %520 = vmatpush2.msra.mxu1 %v413_v24 }
  0xfe   :  { %v178_v10 = vpop.f32.mrf.mxu0 }
  0xff   :  { %v260_v11 = vadd.f32 %v665_v9, %v178_v10  ;;  %v643_v9 = vld [vmem:[%s1123_s1] sm:$0xf]  ;;  %s821_s1 = smov 126  }
 0x100   :  { %v180_v53 = vpop.f32.mrf.mxu0  ;;  %645 = vrot.lane.b32.xlu0 %v643_v9, %s820_s18  ;;  %v445_v10 = vld [vmem:[%s1129_s7] sm:$0x3] }
 0x101   :  { %v261_v12 = vmax.f32 %v260_v11, 0.0  ;;  %v450_v11 = vrot.slane %v445_v10, %v369_v50 }
 0x103   :  { %359 = vmatmul.mubr.f32.vlgmr.msra.gmra.mxu0 %v261_v12  ;;  %v1008_v14 = vpop.f32.mrf.mxu1  ;;  %v454_v12 = vrot.slane %v445_v10, %v373_v52 }
 0x104   :  { %685 = vmatpush3.msra.mxu0 %v545_v26 }
 0x105   :  { %v753_v17 = vpop.f32.mrf.mxu1  ;;  %686 = vmatprep.subr.mxu0 %v560_v27 }
 0x106   :  { %687 = vmatpush3.msra.mxu0 %v544_v0 }
 0x107   :  { %688 = vmatprep.subr.mxu0 %v559_v28 }
 0x108   :  { %689 = vmatpush3.msra.mxu0 %v543_v29 }
 0x109   :  { %690 = vmatprep.subr.mxu0 %v558_v30 }
 0x10a   :  { %691 = vmatpush3.msra.mxu0 %v542_v31 }
 0x10b   :  { %692 = vmatprep.subr.mxu0 %v557_v32 }
 0x10c   :  { %693 = vmatpush3.msra.mxu0 %v541_v33 }
 0x10d   :  { %694 = vmatprep.subr.mxu0 %v556_v34 }
 0x10e   :  { %695 = vmatpush3.msra.mxu0 %v540_v35 }
 0x10f   :  { %696 = vmatprep.subr.mxu0 %v555_v36 }
 0x110   :  { %697 = vmatpush3.msra.mxu0 %v539_v37 }
 0x111   :  { %698 = vmatprep.subr.mxu0 %v554_v38 }
 0x112   :  { %699 = vmatpush3.msra.mxu0 %v538_v39 }
 0x113   :  { %700 = vmatprep.subr.mxu0 %v553_v40 }
 0x114   :  { %701 = vmatpush3.msra.mxu0 %v537_v41 }
 0x115   :  { %702 = vmatprep.subr.mxu0 %v552_v42 }
 0x116   :  { %703 = vmatpush3.msra.mxu0 %v536_v43 }
 0x117   :  { %704 = vmatprep.subr.mxu0 %v551_v44 }
 0x118   :  { %705 = vmatpush3.msra.mxu0 %v535_v45 }
 0x119   :  { %706 = vmatprep.subr.mxu0 %v550_v46 }
 0x11a   :  { %707 = vmatpush3.msra.mxu0 %v534_v47 }
 0x11b   :  { %708 = vmatprep.subr.mxu0 %v549_v1 }
 0x11c   :  { %709 = vmatpush3.msra.mxu0 %v533_v2 }
 0x11d   :  { %710 = vmatprep.subr.mxu0 %v548_v3 }
 0x11e   :  { %711 = vmatpush3.msra.mxu0 %v532_v4 }
 0x11f   :  { %712 = vmatprep.subr.mxu0 %v547_v5 }
 0x120   :  { %713 = vmatpush3.msra.mxu0 %v531_v6 }
 0x121   :  { %714 = vmatprep.subr.mxu0 %v546_v7 }
 0x122   :  { %715 = vmatpush3.msra.mxu0 %v530_v8 }
 0x172   :  { %v646_v27 = vpop.permute.xlu0 %645 }
 0x1c3   :  { %v360_v54 = vpop.f32.mrf.mxu0 }
 0x1c4   :  { %v361_v56 = vadd.f32 %v360_v54, %v180_v53 }
 0x1c5   :  { %v362_v58 = vpop.f32.mrf.mxu0 }
 0x1c6   :  { %v363_v59 = vadd.f32 %v362_v58, %v1008_v14  ;;  %v377_v60 = vadd.f32 %v370_v55, %v361_v56 }
 0x1c8   :  { %v378_v61 = vadd.f32 %v374_v57, %v363_v59  ;;  %v379_v63 = vmax.f32 %v377_v60, 0.0 }
 0x1ca   :  { %v380_v62 = vmax.f32 %v378_v61, 0.0 }
 0x1cc   :  { %521 = vmatprep.mubr.f32.mxu1 %v380_v62 }
 0x1cd   :  { %522 = vmatmul.mubr.f32.vlgmr.msra.gmra.mxu1 %v379_v63 }
 0x28d   :  { %v523_v13 = vpop.f32.mrf.mxu1 }
 0x28e   :  { %v524_v14 = vadd.f32 %v523_v13, %v450_v11 }
 0x28f   :  { %v525_v15 = vpop.f32.mrf.mxu1 }
 0x290   :  { %v526_v16 = vadd.f32 %v525_v15, %v454_v12  ;;  %v528_v18 = vmax.f32 %v524_v14, 0.0 }
 0x292   :  { %v529_v17 = vmax.f32 %v526_v16, 0.0 }
 0x294   :  { %633 = vmatprep.mubr.f32.mxu0 %v529_v17 }
 0x295   :  { %634 = vmatmul.mubr.f32.vlgmr.msra.gmra.mxu0 %v528_v18 }
 0x355   :  { %v716_v19 = vpop.f32.mrf.mxu0 }
 0x357   :  { %v717_v21 = vpop.f32.mrf.mxu0 }
 0x358   :  { %v718_v22 = vadd.f32 %v717_v21, %v716_v19 }
 0x35a   :  { %v636_v23 = vadd.f32 %v718_v22, %v666_v20 }
 0x35c   :  { %v639_v24 = vmax.f32 %v636_v23, -20.0 }
 0x35e   :  { %v640_v25 = vmin.f32 %v639_v24, 2.0 }
 0x360   :  { %v641_v26 = vmul.f32 1.442695, %v640_v25 }
 0x362   :  { %764 = vpow2.f32 %v641_v26 }
 0x36f   :  { %v765_v0 = vpop.eup %764 }
 0x370   :  { %v648_v28 = vmul.f32 %v765_v0, %v646_v27 }
 0x372   :  { %650 = vrot.lane.b32.xlu0 %v648_v28, %s821_s1 }
 0x3e4   :  { %v651_v29 = vpop.permute.xlu0 %650 }
 0x3e5   :  { %v653_v30 = vadd.f32 %v651_v29, %v636_v23 }
 0x3e7   :  { %766 = vtanh.f32 %v653_v30 }
 0x3f4   :  { %v767_v31 = vpop.eup %766 }
 0x3f5   :  { %v656_v32 = vsel %vm655_vm1, %v767_v31, %v640_v25 }
 0x3f6   :  { %658 = vst.msk [vmem:[%s1132_s10] sm:$0xf] %vm657_vm2, %v656_v32 }
 0x3f7   :  { %663 = vsyncpa [#allocation3], 1 }
 0x3f8   :  { %664 = vsyncpa [#allocation5], 1 }

</bundles_post_ra>
